<compile_context>
chip_gen: v7x
topology: tpu7x:2x2x1
jax: 0.10.0
libtpu: 0.0.40
codegen_flags: <defaults>
</compile_context>

<pallas_src>
import functools

import jax
import jax.numpy as jnp
from jax.experimental import pallas as pl
from jax.experimental.pallas import tpu as pltpu

# ---------------------------------------------------------------------------
# Model dimensions (small, consistent with the module's constructor args)
# ---------------------------------------------------------------------------
B = 2                     # batch
N_SPEAKERS = 4
SPK_DIM = 16              # speaker_embedding_dim
HIDDEN = 32               # hidden_dim
MEL_FRAME_BATCH = 4       # mel_frame_batch_size
VOCAB = 32                # symbol vocabulary
T_SYM = 8                 # symbol sequence length
EMB_DIM = 16              # symbol embedding dim
N_MEL = 8                 # mel bins
T_MEL = 8                 # mel frames -> T_MEL // MEL_FRAME_BATCH = 2 decoder steps
N_LIN = 16                # linear-spectrogram bins

_VMEM = pl.BlockSpec(memory_space=pltpu.MemorySpace.VMEM)
_LANES = 128


def _round8(n):
    return ((n + 7) // 8) * 8


# ---------------------------------------------------------------------------
# Static layout of the packed weight slab (one [rows, 128] f32 operand).
# Row starts are padded to multiples of 8 so in-kernel static slices stay
# sublane-aligned; lanes are zero-padded to 128.
# ---------------------------------------------------------------------------
_WEIGHT_BLOCKS = (
    ('spk_tab',  (N_SPEAKERS, SPK_DIM)),         # speaker embedding table
    ('sym_tab',  (VOCAB, EMB_DIM)),              # symbol embedding table
    ('enc_w_in', (EMB_DIM + SPK_DIM, HIDDEN)),   # [w1 ; ws]
    ('enc_b1',   (1, HIDDEN)),
    ('enc_wk',   (HIDDEN, HIDDEN)),
    ('enc_bk',   (1, HIDDEN)),
    ('enc_wv',   (HIDDEN, HIDDEN)),
    ('enc_bv',   (1, HIDDEN)),
    ('dec_wqm',  (N_MEL, HIDDEN)),
    ('dec_wqs',  (SPK_DIM, HIDDEN)),
    ('dec_bq',   (1, HIDDEN)),
    ('dec_w_md', (HIDDEN, N_MEL + 1)),           # [wm | wd]
    ('dec_b_md', (1, N_MEL + 1)),
    ('conv_w1',  (T_SYM, HIDDEN)),
    ('conv_b1',  (1, HIDDEN)),
    ('conv_w2',  (HIDDEN, N_LIN)),
    ('conv_b2',  (1, N_LIN)),
)

_W_OFFSETS = {}
_row_cursor = 0
for _name, (_r, _c) in _WEIGHT_BLOCKS:
    _W_OFFSETS[_name] = (_row_cursor, _r, _c)
    _row_cursor += _round8(_r)
_W_ROWS = _row_cursor                            # 288 rows -> 144 KiB slab


# ---------------------------------------------------------------------------
# The single fused Pallas kernel
# ---------------------------------------------------------------------------
def _deepvoice_fused_kernel(spk_ids_ref, sym_ids_ref, w_ref,
                            attn_ref, mel_ref, done_ref, lin_ref):
    f32 = jnp.float32
    bsz, n_steps, tsym = attn_ref.shape
    n_mel = mel_ref.shape[2]
    n_lin = lin_ref.shape[2]
    bt = sym_ids_ref.shape[0]                    # B * T_sym

    def w(name):
        r0, rows, cols = _W_OFFSETS[name]
        return w_ref[r0:r0 + rows, :cols]        # static, offset-0 slices only

    # ---------------- in-kernel embedding lookups (one-hot @ table on MXU) ---
    sym_oh = (jax.lax.broadcasted_iota(jnp.int32, (bt, VOCAB), 1)
              == sym_ids_ref[...]).astype(f32)                           # [B*T, V]
    sym_emb = jnp.dot(sym_oh, w('sym_tab'), preferred_element_type=f32)  # [B*T, E]
    spk_oh = (jax.lax.broadcasted_iota(jnp.int32, (bsz, N_SPEAKERS), 1)
              == spk_ids_ref[...]).astype(f32)                           # [B, n_spk]
    spk_emb = jnp.dot(spk_oh, w('spk_tab'), preferred_element_type=f32)  # [B, S]

    # ---------------- encoder (fused [sym|spk] input projection) ------------
    spk_rep = jnp.broadcast_to(spk_emb[:, None, :],
                               (bsz, tsym, SPK_DIM)).reshape(bt, SPK_DIM)
    enc_in = jnp.concatenate([sym_emb, spk_rep], axis=-1)                # [B*T, E+S]
    h = jnp.maximum(
        jnp.dot(enc_in, w('enc_w_in'), preferred_element_type=f32) + w('enc_b1'),
        0.0)                                                             # [B*T, H]
    # wk / wv un-fused: avoids a lane-offset-32 slice of a packed kv result.
    keys = (jnp.dot(h, w('enc_wk'), preferred_element_type=f32)
            + w('enc_bk')).reshape(bsz, tsym, HIDDEN)                    # [B, T, H]
    vals = (jnp.dot(h, w('enc_wv'), preferred_element_type=f32)
            + w('enc_bv')).reshape(bsz, tsym, HIDDEN)                    # [B, T, H]

    # ---------------- loop-invariant decoder terms (hoisted) -----------------
    q_base = (jnp.dot(spk_emb, w('dec_wqs'), preferred_element_type=f32)
              + w('dec_bq'))                                             # [B, H]
    wqm = w('dec_wqm')
    w_md = w('dec_w_md')
    b_md = w('dec_b_md')
    scale = HIDDEN ** -0.5

    # ---------------- autoregressive decoder loop (static, unrolled) ---------
    mel = jnp.zeros((bsz, n_mel), f32)
    for t in range(n_steps):
        q = jnp.dot(mel, wqm, preferred_element_type=f32) + q_base       # [B, H]
        # Attention stays in the [B, T, 1] (sublane-T) layout end-to-end:
        # keepdims reductions avoid a lanes<->sublanes relayout per step.
        scores = jnp.sum(q[:, None, :] * keys, axis=-1, keepdims=True) * scale
        m = jnp.max(scores, axis=1, keepdims=True)
        e = jnp.exp(scores - m)
        attn = e * pl.reciprocal(jnp.sum(e, axis=1, keepdims=True), approx=False)
        ctx = jnp.sum(attn * vals, axis=1)                               # [B, H]
        # fused mel|done output head
        md = jnp.dot(ctx, w_md, preferred_element_type=f32) + b_md       # [B, n_mel+1]
        mel = jnp.tanh(md[:, :n_mel])
        # single relayout per step: attention row to lane layout for output
        attn_ref[:, t, :] = attn[..., 0]
        mel_ref[:, t, :] = mel
        done_ref[:, t, :] = jax.nn.sigmoid(md[:, n_mel:n_mel + 1])

    # ---------------- converter over the stacked attention -------------------
    rows = attn_ref[...].reshape(bsz * n_steps, tsym)                    # [B*steps, T]
    ch = jnp.maximum(
        jnp.dot(rows, w('conv_w1'), preferred_element_type=f32) + w('conv_b1'),
        0.0)
    lin = jnp.dot(ch, w('conv_w2'), preferred_element_type=f32) + w('conv_b2')
    lin_ref[...] = lin.reshape(bsz, n_steps, n_lin)


# ---------------------------------------------------------------------------
# Weight packing: runs ONCE outside jit (perf review item #1)
# ---------------------------------------------------------------------------
def pack_weights(params):
    enc, dec, conv = params['encoder'], params['decoder'], params['converter']
    blocks = {
        'spk_tab': params['speaker_embedding'],
        'sym_tab': params['symbol_embedding'],
        'enc_w_in': jnp.concatenate([enc['w1'], enc['ws']], axis=0),
        'enc_b1': enc['b1'],
        'enc_wk': enc['wk'], 'enc_bk': enc['bk'],
        'enc_wv': enc['wv'], 'enc_bv': enc['bv'],
        'dec_wqm': dec['wqm'], 'dec_wqs': dec['wqs'], 'dec_bq': dec['bq'],
        'dec_w_md': jnp.concatenate([dec['wm'], dec['wd']], axis=1),
        'dec_b_md': jnp.concatenate([dec['bm'], dec['bd']], axis=1),
        'conv_w1': conv['w1'], 'conv_b1': conv['b1'],
        'conv_w2': conv['w2'], 'conv_b2': conv['b2'],
    }
    parts = []
    for name, (rows, cols) in _WEIGHT_BLOCKS:
        a = jnp.asarray(blocks[name], jnp.float32)
        assert a.shape == (rows, cols), (name, a.shape)
        parts.append(jnp.pad(a, ((0, _round8(rows) - rows), (0, _LANES - cols))))
    return jnp.concatenate(parts, axis=0)        # [_W_ROWS, 128]


# ---------------------------------------------------------------------------
# Parameter initialization (deterministic, in-script)
# ---------------------------------------------------------------------------
def init_params(key):
    ks = jax.random.split(key, 16)
    n = lambda k, shape: (0.1 * jax.random.normal(k, shape)).astype(jnp.float32)
    return {
        'speaker_embedding': n(ks[0], (N_SPEAKERS, SPK_DIM)),
        'symbol_embedding': n(ks[1], (VOCAB, EMB_DIM)),
        'encoder': {
            'w1': n(ks[2], (EMB_DIM, HIDDEN)),
            'ws': n(ks[3], (SPK_DIM, HIDDEN)),
            'b1': jnp.zeros((1, HIDDEN), jnp.float32),
            'wk': n(ks[4], (HIDDEN, HIDDEN)),
            'bk': jnp.zeros((1, HIDDEN), jnp.float32),
            'wv': n(ks[5], (HIDDEN, HIDDEN)),
            'bv': jnp.zeros((1, HIDDEN), jnp.float32),
        },
        'decoder': {
            'wqm': n(ks[6], (N_MEL, HIDDEN)),
            'wqs': n(ks[7], (SPK_DIM, HIDDEN)),
            'bq': jnp.zeros((1, HIDDEN), jnp.float32),
            'wm': n(ks[8], (HIDDEN, N_MEL)),
            'bm': jnp.zeros((1, N_MEL), jnp.float32),
            'wd': n(ks[9], (HIDDEN, 1)),
            'bd': jnp.zeros((1, 1), jnp.float32),
        },
        'converter': {
            'w1': n(ks[10], (T_SYM, HIDDEN)),
            'b1': jnp.zeros((1, HIDDEN), jnp.float32),
            'w2': n(ks[11], (HIDDEN, N_LIN)),
            'b2': jnp.zeros((1, N_LIN), jnp.float32),
        },
    }


# ---------------------------------------------------------------------------
# DeepVoice.forward equivalent (one pallas_call; wrapper emits no compute)
# ---------------------------------------------------------------------------
def deepvoice_forward(w_slab, batch, mel_frame_batch_size=MEL_FRAME_BATCH):
    speaker_ids = batch['speaker_id']            # [B] int32
    symbols = batch['symbols']                   # [B, T_sym] int32
    _ = batch['linear_spec']                     # unused by the reference forward
    mel_spec = batch['mel_spec']                 # [B, T_mel, n_mel]

    bsz = speaker_ids.shape[0]
    tsym = symbols.shape[1]
    n_steps = mel_spec.shape[1] // mel_frame_batch_size

    spk_ids = speaker_ids.reshape(bsz, 1).astype(jnp.int32)
    sym_ids = symbols.reshape(bsz * tsym, 1).astype(jnp.int32)

    out_shapes = (
        jax.ShapeDtypeStruct((bsz, n_steps, tsym), jnp.float32),   # acc_attn
        jax.ShapeDtypeStruct((bsz, n_steps, N_MEL), jnp.float32),  # acc_mel_out
        jax.ShapeDtypeStruct((bsz, n_steps, 1), jnp.float32),      # acc_done_out
        jax.ShapeDtypeStruct((bsz, n_steps, N_LIN), jnp.float32),  # lin_spec_pred
    )
    # TODO(synk): add a batch grid axis + dimension_semantics=("parallel",) if
    # batch/step count grows enough to use the second TensorCore on v7x.
    return pl.pallas_call(
        _deepvoice_fused_kernel,
        out_shape=out_shapes,
        in_specs=[_VMEM, _VMEM, _VMEM],
        out_specs=(_VMEM, _VMEM, _VMEM, _VMEM),
    )(spk_ids, sym_ids, w_slab)


# ---------------------------------------------------------------------------
# Pure-JAX reference (same math, XLA ops) for correctness check
# ---------------------------------------------------------------------------
def deepvoice_reference(params, batch, mel_frame_batch_size=MEL_FRAME_BATCH):
    with jax.default_matmul_precision('float32'):
        enc, dec, conv = params['encoder'], params['decoder'], params['converter']
        spk = params['speaker_embedding'][batch['speaker_id']]
        sym = params['symbol_embedding'][batch['symbols']]
        bsz, tsym, _ = sym.shape
        n_steps = batch['mel_spec'].shape[1] // mel_frame_batch_size
        enc_in = jnp.concatenate(
            [sym.reshape(bsz * tsym, -1), jnp.repeat(spk, tsym, axis=0)], axis=-1)
        h = jax.nn.relu(
            enc_in @ jnp.concatenate([enc['w1'], enc['ws']], axis=0) + enc['b1'])
        keys = (h @ enc['wk'] + enc['bk']).reshape(bsz, tsym, HIDDEN)
        vals = (h @ enc['wv'] + enc['bv']).reshape(bsz, tsym, HIDDEN)
        q_base = spk @ dec['wqs'] + dec['bq']
        mel = jnp.zeros((bsz, N_MEL), jnp.float32)
        attns, mels, dones = [], [], []
        for _ in range(n_steps):
            q = mel @ dec['wqm'] + q_base
            scores = jnp.einsum('bh,bth->bt', q, keys) * HIDDEN ** -0.5
            attn = jax.nn.softmax(scores, axis=-1)
            ctx = jnp.einsum('bt,bth->bh', attn, vals)
            mel = jnp.tanh(ctx @ dec['wm'] + dec['bm'])
            done = jax.nn.sigmoid(ctx @ dec['wd'] + dec['bd'])
            attns.append(attn); mels.append(mel); dones.append(done)
        acc_attn = jnp.stack(attns, axis=1)
        acc_mel = jnp.stack(mels, axis=1)
        acc_done = jnp.stack(dones, axis=1)
        rows = acc_attn.reshape(bsz * n_steps, tsym)
        lin = jax.nn.relu(rows @ conv['w1'] + conv['b1']) @ conv['w2'] + conv['b2']
        return acc_attn, acc_mel, acc_done, lin.reshape(bsz, n_steps, N_LIN)


# ---------------------------------------------------------------------------
# Driver
# ---------------------------------------------------------------------------
if __name__ == "__main__":
    key = jax.random.PRNGKey(0)
    k_ids, k_sym, k_lin, k_mel = jax.random.split(key, 4)

    batch = {
        'speaker_id': jax.random.randint(k_ids, (B,), 0, N_SPEAKERS, dtype=jnp.int32),
        'symbols': jax.random.randint(k_sym, (B, T_SYM), 0, VOCAB, dtype=jnp.int32),
        'linear_spec': jax.random.normal(k_lin, (B, T_MEL, N_LIN), dtype=jnp.float32),
        'mel_spec': jax.random.normal(k_mel, (B, T_MEL, N_MEL), dtype=jnp.float32),
    }
    params = init_params(jax.random.PRNGKey(42))

    # Pack weights ONCE, outside the jitted per-call path.
    w_slab = jax.block_until_ready(pack_weights(params))
    assert w_slab.shape == (_W_ROWS, _LANES)

    fwd = jax.jit(functools.partial(deepvoice_forward,
                                    mel_frame_batch_size=MEL_FRAME_BATCH))
    acc_attn, acc_mel, acc_done, lin_pred = fwd(w_slab, batch)
    jax.block_until_ready((acc_attn, acc_mel, acc_done, lin_pred))

    n_steps = T_MEL // MEL_FRAME_BATCH
    assert acc_attn.shape == (B, n_steps, T_SYM)
    assert acc_mel.shape == (B, n_steps, N_MEL)
    assert acc_done.shape == (B, n_steps, 1)
    assert lin_pred.shape == (B, n_steps, N_LIN)

    ref_outs = deepvoice_reference(params, batch, MEL_FRAME_BATCH)
    for got, want in zip((acc_attn, acc_mel, acc_done, lin_pred), ref_outs):
        assert bool(jnp.all(jnp.isfinite(got)))
        assert bool(jnp.allclose(got, want, atol=2e-3, rtol=2e-3)), \
            float(jnp.max(jnp.abs(got - want)))
    # attention rows are exact softmaxes -> sum to 1
    assert bool(jnp.all(jnp.abs(jnp.sum(acc_attn, axis=-1) - 1.0) < 1e-3))

    print("KERNEL_OK")
</pallas_src>

<mosaic_0001>
module attributes {stable_mosaic.version = 11 : i64} {
  func.func @_deepvoice_fused_kernel(%arg0: memref<2x1xi32, #tpu.memory_space<vmem>>, %arg1: memref<16x1xi32, #tpu.memory_space<vmem>>, %arg2: memref<288x128xf32, #tpu.memory_space<vmem>>, %arg3: memref<2x2x8xf32, #tpu.memory_space<vmem>>, %arg4: memref<2x2x8xf32, #tpu.memory_space<vmem>>, %arg5: memref<2x2x1xf32, #tpu.memory_space<vmem>>, %arg6: memref<2x2x16xf32, #tpu.memory_space<vmem>>) attributes {dimension_semantics = [], scalar_prefetch = 0 : i64, scratch_operands = 0 : i64, tpu.core_type = #tpu.core_type<tc>} {
    %0 = tpu.iota {dimensions = array<i32: 1>} : vector<16x32xi32>
    %c0 = arith.constant 0 : index
    %c0_0 = arith.constant 0 : index
    %1 = vector.load %arg1[%c0, %c0_0] : memref<16x1xi32, #tpu.memory_space<vmem>>, vector<16x1xi32>
    %2 = vector.broadcast %1 : vector<16x1xi32> to vector<16x32xi32>
    %3 = arith.cmpi eq, %0, %2 : vector<16x32xi32>
    %4 = arith.extui %3 : vector<16x32xi1> to vector<16x32xi32>
    %5 = arith.sitofp %4 : vector<16x32xi32> to vector<16x32xf32>
    %c8 = arith.constant 8 : index
    %c0_1 = arith.constant 0 : index
    %6 = vector.load %arg2[%c8, %c0_1] : memref<288x128xf32, #tpu.memory_space<vmem>>, vector<32x16xf32>
    %cst = arith.constant dense<0.000000e+00> : vector<16x16xf32>
    %7 = tpu.matmul %5, %6, %cst {dimension_numbers = #tpu.dot_dimension_numbers<[1], [0], [0], [1], [0, 0, 1, 1], [], []>} : vector<16x32xf32>, vector<32x16xf32>, vector<16x16xf32> -> vector<16x16xf32>
    %8 = tpu.iota {dimensions = array<i32: 1>} : vector<2x4xi32>
    %c0_2 = arith.constant 0 : index
    %c0_3 = arith.constant 0 : index
    %9 = vector.load %arg0[%c0_2, %c0_3] : memref<2x1xi32, #tpu.memory_space<vmem>>, vector<2x1xi32>
    %10 = vector.broadcast %9 : vector<2x1xi32> to vector<2x4xi32>
    %11 = arith.cmpi eq, %8, %10 : vector<2x4xi32>
    %12 = arith.extui %11 : vector<2x4xi1> to vector<2x4xi32>
    %13 = arith.sitofp %12 : vector<2x4xi32> to vector<2x4xf32>
    %c0_4 = arith.constant 0 : index
    %c0_5 = arith.constant 0 : index
    %14 = vector.load %arg2[%c0_4, %c0_5] : memref<288x128xf32, #tpu.memory_space<vmem>>, vector<4x16xf32>
    %cst_6 = arith.constant dense<0.000000e+00> : vector<2x16xf32>
    %15 = tpu.matmul %13, %14, %cst_6 {dimension_numbers = #tpu.dot_dimension_numbers<[1], [0], [0], [1], [0, 0, 1, 1], [], []>} : vector<2x4xf32>, vector<4x16xf32>, vector<2x16xf32> -> vector<2x16xf32>
    %16 = vector.shape_cast %15 : vector<2x16xf32> to vector<2x1x16xf32>
    %17 = vector.shape_cast %16 : vector<2x1x16xf32> to vector<2x1x16xf32>
    %18 = vector.broadcast %17 : vector<2x1x16xf32> to vector<2x8x16xf32>
    %19 = vector.shape_cast %18 : vector<2x8x16xf32> to vector<16x16xf32>
    %20 = tpu.concatenate %7, %19 in 1 : vector<16x16xf32>, vector<16x16xf32> -> vector<16x32xf32>
    %c40 = arith.constant 40 : index
    %c0_7 = arith.constant 0 : index
    %21 = vector.load %arg2[%c40, %c0_7] : memref<288x128xf32, #tpu.memory_space<vmem>>, vector<32x32xf32>
    %cst_8 = arith.constant dense<0.000000e+00> : vector<16x32xf32>
    %22 = tpu.matmul %20, %21, %cst_8 {dimension_numbers = #tpu.dot_dimension_numbers<[1], [0], [0], [1], [0, 0, 1, 1], [], []>} : vector<16x32xf32>, vector<32x32xf32>, vector<16x32xf32> -> vector<16x32xf32>
    %c72 = arith.constant 72 : index
    %c0_9 = arith.constant 0 : index
    %23 = vector.load %arg2[%c72, %c0_9] : memref<288x128xf32, #tpu.memory_space<vmem>>, vector<1x32xf32>
    %24 = vector.broadcast %23 : vector<1x32xf32> to vector<16x32xf32>
    %25 = arith.addf %22, %24 : vector<16x32xf32>
    %cst_10 = arith.constant 0.000000e+00 : f32
    %26 = vector.broadcast %cst_10 : f32 to vector<16x32xf32>
    %27 = arith.maximumf %25, %26 : vector<16x32xf32>
    %c80 = arith.constant 80 : index
    %c0_11 = arith.constant 0 : index
    %28 = vector.load %arg2[%c80, %c0_11] : memref<288x128xf32, #tpu.memory_space<vmem>>, vector<32x32xf32>
    %cst_12 = arith.constant dense<0.000000e+00> : vector<16x32xf32>
    %29 = tpu.matmul %27, %28, %cst_12 {dimension_numbers = #tpu.dot_dimension_numbers<[1], [0], [0], [1], [0, 0, 1, 1], [], []>} : vector<16x32xf32>, vector<32x32xf32>, vector<16x32xf32> -> vector<16x32xf32>
    %c112 = arith.constant 112 : index
    %c0_13 = arith.constant 0 : index
    %30 = vector.load %arg2[%c112, %c0_13] : memref<288x128xf32, #tpu.memory_space<vmem>>, vector<1x32xf32>
    %31 = vector.broadcast %30 : vector<1x32xf32> to vector<16x32xf32>
    %32 = arith.addf %29, %31 : vector<16x32xf32>
    %33 = vector.shape_cast %32 : vector<16x32xf32> to vector<2x8x32xf32>
    %c120 = arith.constant 120 : index
    %c0_14 = arith.constant 0 : index
    %34 = vector.load %arg2[%c120, %c0_14] : memref<288x128xf32, #tpu.memory_space<vmem>>, vector<32x32xf32>
    %cst_15 = arith.constant dense<0.000000e+00> : vector<16x32xf32>
    %35 = tpu.matmul %27, %34, %cst_15 {dimension_numbers = #tpu.dot_dimension_numbers<[1], [0], [0], [1], [0, 0, 1, 1], [], []>} : vector<16x32xf32>, vector<32x32xf32>, vector<16x32xf32> -> vector<16x32xf32>
    %c152 = arith.constant 152 : index
    %c0_16 = arith.constant 0 : index
    %36 = vector.load %arg2[%c152, %c0_16] : memref<288x128xf32, #tpu.memory_space<vmem>>, vector<1x32xf32>
    %37 = vector.broadcast %36 : vector<1x32xf32> to vector<16x32xf32>
    %38 = arith.addf %35, %37 : vector<16x32xf32>
    %39 = vector.shape_cast %38 : vector<16x32xf32> to vector<2x8x32xf32>
    %c168 = arith.constant 168 : index
    %c0_17 = arith.constant 0 : index
    %40 = vector.load %arg2[%c168, %c0_17] : memref<288x128xf32, #tpu.memory_space<vmem>>, vector<16x32xf32>
    %cst_18 = arith.constant dense<0.000000e+00> : vector<2x32xf32>
    %41 = tpu.matmul %15, %40, %cst_18 {dimension_numbers = #tpu.dot_dimension_numbers<[1], [0], [0], [1], [0, 0, 1, 1], [], []>} : vector<2x16xf32>, vector<16x32xf32>, vector<2x32xf32> -> vector<2x32xf32>
    %c184 = arith.constant 184 : index
    %c0_19 = arith.constant 0 : index
    %42 = vector.load %arg2[%c184, %c0_19] : memref<288x128xf32, #tpu.memory_space<vmem>>, vector<1x32xf32>
    %43 = vector.broadcast %42 : vector<1x32xf32> to vector<2x32xf32>
    %44 = arith.addf %41, %43 : vector<2x32xf32>
    %c160 = arith.constant 160 : index
    %c0_20 = arith.constant 0 : index
    %45 = vector.load %arg2[%c160, %c0_20] : memref<288x128xf32, #tpu.memory_space<vmem>>, vector<8x32xf32>
    %c192 = arith.constant 192 : index
    %c0_21 = arith.constant 0 : index
    %46 = vector.load %arg2[%c192, %c0_21] : memref<288x128xf32, #tpu.memory_space<vmem>>, vector<32x9xf32>
    %c224 = arith.constant 224 : index
    %c0_22 = arith.constant 0 : index
    %47 = vector.load %arg2[%c224, %c0_22] : memref<288x128xf32, #tpu.memory_space<vmem>>, vector<1x9xf32>
    %cst_23 = arith.constant 0.000000e+00 : f32
    %48 = vector.broadcast %cst_23 : f32 to vector<2x8xf32>
    %cst_24 = arith.constant dense<0.000000e+00> : vector<2x32xf32>
    %49 = tpu.matmul %48, %45, %cst_24 {dimension_numbers = #tpu.dot_dimension_numbers<[1], [0], [0], [1], [0, 0, 1, 1], [], []>} : vector<2x8xf32>, vector<8x32xf32>, vector<2x32xf32> -> vector<2x32xf32>
    %50 = arith.addf %49, %44 : vector<2x32xf32>
    %51 = vector.shape_cast %50 : vector<2x32xf32> to vector<2x1x32xf32>
    %52 = vector.broadcast %51 : vector<2x1x32xf32> to vector<2x8x32xf32>
    %53 = arith.mulf %52, %33 : vector<2x8x32xf32>
    %cst_25 = arith.constant dense<0.000000e+00> : vector<2x8xf32>
    %54 = vector.multi_reduction <add>, %53, %cst_25 [2] : vector<2x8x32xf32> to vector<2x8xf32>
    %55 = vector.shape_cast %54 : vector<2x8xf32> to vector<2x8x1xf32>
    %cst_26 = arith.constant 0.176776692 : f32
    %56 = vector.broadcast %cst_26 : f32 to vector<2x8x1xf32>
    %57 = arith.mulf %55, %56 : vector<2x8x1xf32>
    %cst_27 = arith.constant dense<0xFF800000> : vector<2x1xf32>
    %58 = vector.multi_reduction <maximumf>, %57, %cst_27 [1] : vector<2x8x1xf32> to vector<2x1xf32>
    %59 = vector.shape_cast %58 : vector<2x1xf32> to vector<2x1x1xf32>
    %60 = vector.broadcast %59 : vector<2x1x1xf32> to vector<2x8x1xf32>
    %61 = arith.subf %57, %60 : vector<2x8x1xf32>
    %62 = math.exp %61 : vector<2x8x1xf32>
    %cst_28 = arith.constant dense<0.000000e+00> : vector<2x1xf32>
    %63 = vector.multi_reduction <add>, %62, %cst_28 [1] : vector<2x8x1xf32> to vector<2x1xf32>
    %64 = vector.shape_cast %63 : vector<2x1xf32> to vector<2x1x1xf32>
    %65 = tpu.reciprocal %64 : vector<2x1x1xf32> -> vector<2x1x1xf32>
    %66 = vector.broadcast %65 : vector<2x1x1xf32> to vector<2x8x1xf32>
    %67 = arith.mulf %62, %66 : vector<2x8x1xf32>
    %68 = vector.broadcast %67 : vector<2x8x1xf32> to vector<2x8x32xf32>
    %69 = arith.mulf %68, %39 : vector<2x8x32xf32>
    %cst_29 = arith.constant dense<0.000000e+00> : vector<2x32xf32>
    %70 = vector.multi_reduction <add>, %69, %cst_29 [1] : vector<2x8x32xf32> to vector<2x32xf32>
    %cst_30 = arith.constant dense<0.000000e+00> : vector<2x9xf32>
    %71 = tpu.matmul %70, %46, %cst_30 {dimension_numbers = #tpu.dot_dimension_numbers<[1], [0], [0], [1], [0, 0, 1, 1], [], []>} : vector<2x32xf32>, vector<32x9xf32>, vector<2x9xf32> -> vector<2x9xf32>
    %72 = vector.broadcast %47 : vector<1x9xf32> to vector<2x9xf32>
    %73 = arith.addf %71, %72 : vector<2x9xf32>
    %74 = vector.extract_strided_slice %73 {offsets = [0, 0], sizes = [2, 8], strides = [1, 1]} : vector<2x9xf32> to vector<2x8xf32>
    %75 = math.tanh %74 : vector<2x8xf32>
    %76 = vector.shape_cast %67 : vector<2x8x1xf32> to vector<2x8xf32>
    %c0_31 = arith.constant 0 : index
    %c0_32 = arith.constant 0 : index
    %c0_33 = arith.constant 0 : index
    %77 = vector.load %arg3[%c0_31, %c0_32, %c0_33] : memref<2x2x8xf32, #tpu.memory_space<vmem>>, vector<2x1x8xf32>
    %78 = vector.shape_cast %77 : vector<2x1x8xf32> to vector<2x8xf32>
    %79 = vector.shape_cast %76 : vector<2x8xf32> to vector<2x1x8xf32>
    tpu.vector_store %arg3[%c0_31, %c0_32, %c0_33], %79 {strides = array<i32>} : memref<2x2x8xf32, #tpu.memory_space<vmem>>, vector<2x1x8xf32>,
    %c0_34 = arith.constant 0 : index
    %c0_35 = arith.constant 0 : index
    %c0_36 = arith.constant 0 : index
    %80 = vector.load %arg4[%c0_34, %c0_35, %c0_36] : memref<2x2x8xf32, #tpu.memory_space<vmem>>, vector<2x1x8xf32>
    %81 = vector.shape_cast %80 : vector<2x1x8xf32> to vector<2x8xf32>
    %82 = vector.shape_cast %75 : vector<2x8xf32> to vector<2x1x8xf32>
    tpu.vector_store %arg4[%c0_34, %c0_35, %c0_36], %82 {strides = array<i32>} : memref<2x2x8xf32, #tpu.memory_space<vmem>>, vector<2x1x8xf32>,
    %83 = vector.extract_strided_slice %73 {offsets = [0, 8], sizes = [2, 1], strides = [1, 1]} : vector<2x9xf32> to vector<2x1xf32>
    %84 = arith.negf %83 : vector<2x1xf32>
    %85 = math.exp %84 : vector<2x1xf32>
    %cst_37 = arith.constant 1.000000e+00 : f32
    %86 = vector.broadcast %cst_37 : f32 to vector<2x1xf32>
    %87 = arith.addf %86, %85 : vector<2x1xf32>
    %88 = arith.divf %86, %87 : vector<2x1xf32>
    %c0_38 = arith.constant 0 : index
    %c0_39 = arith.constant 0 : index
    %c0_40 = arith.constant 0 : index
    %89 = vector.load %arg5[%c0_38, %c0_39, %c0_40] : memref<2x2x1xf32, #tpu.memory_space<vmem>>, vector<2x1x1xf32>
    %90 = vector.shape_cast %89 : vector<2x1x1xf32> to vector<2x1xf32>
    %91 = vector.shape_cast %88 : vector<2x1xf32> to vector<2x1x1xf32>
    tpu.vector_store %arg5[%c0_38, %c0_39, %c0_40], %91 {strides = array<i32>} : memref<2x2x1xf32, #tpu.memory_space<vmem>>, vector<2x1x1xf32>,
    %cst_41 = arith.constant dense<0.000000e+00> : vector<2x32xf32>
    %92 = tpu.matmul %75, %45, %cst_41 {dimension_numbers = #tpu.dot_dimension_numbers<[1], [0], [0], [1], [0, 0, 1, 1], [], []>} : vector<2x8xf32>, vector<8x32xf32>, vector<2x32xf32> -> vector<2x32xf32>
    %93 = arith.addf %92, %44 : vector<2x32xf32>
    %94 = vector.shape_cast %93 : vector<2x32xf32> to vector<2x1x32xf32>
    %95 = vector.broadcast %94 : vector<2x1x32xf32> to vector<2x8x32xf32>
    %96 = arith.mulf %95, %33 : vector<2x8x32xf32>
    %cst_42 = arith.constant dense<0.000000e+00> : vector<2x8xf32>
    %97 = vector.multi_reduction <add>, %96, %cst_42 [2] : vector<2x8x32xf32> to vector<2x8xf32>
    %98 = vector.shape_cast %97 : vector<2x8xf32> to vector<2x8x1xf32>
    %cst_43 = arith.constant 0.176776692 : f32
    %99 = vector.broadcast %cst_43 : f32 to vector<2x8x1xf32>
    %100 = arith.mulf %98, %99 : vector<2x8x1xf32>
    %cst_44 = arith.constant dense<0xFF800000> : vector<2x1xf32>
    %101 = vector.multi_reduction <maximumf>, %100, %cst_44 [1] : vector<2x8x1xf32> to vector<2x1xf32>
    %102 = vector.shape_cast %101 : vector<2x1xf32> to vector<2x1x1xf32>
    %103 = vector.broadcast %102 : vector<2x1x1xf32> to vector<2x8x1xf32>
    %104 = arith.subf %100, %103 : vector<2x8x1xf32>
    %105 = math.exp %104 : vector<2x8x1xf32>
    %cst_45 = arith.constant dense<0.000000e+00> : vector<2x1xf32>
    %106 = vector.multi_reduction <add>, %105, %cst_45 [1] : vector<2x8x1xf32> to vector<2x1xf32>
    %107 = vector.shape_cast %106 : vector<2x1xf32> to vector<2x1x1xf32>
    %108 = tpu.reciprocal %107 : vector<2x1x1xf32> -> vector<2x1x1xf32>
    %109 = vector.broadcast %108 : vector<2x1x1xf32> to vector<2x8x1xf32>
    %110 = arith.mulf %105, %109 : vector<2x8x1xf32>
    %111 = vector.broadcast %110 : vector<2x8x1xf32> to vector<2x8x32xf32>
    %112 = arith.mulf %111, %39 : vector<2x8x32xf32>
    %cst_46 = arith.constant dense<0.000000e+00> : vector<2x32xf32>
    %113 = vector.multi_reduction <add>, %112, %cst_46 [1] : vector<2x8x32xf32> to vector<2x32xf32>
    %cst_47 = arith.constant dense<0.000000e+00> : vector<2x9xf32>
    %114 = tpu.matmul %113, %46, %cst_47 {dimension_numbers = #tpu.dot_dimension_numbers<[1], [0], [0], [1], [0, 0, 1, 1], [], []>} : vector<2x32xf32>, vector<32x9xf32>, vector<2x9xf32> -> vector<2x9xf32>
    %115 = vector.broadcast %47 : vector<1x9xf32> to vector<2x9xf32>
    %116 = arith.addf %114, %115 : vector<2x9xf32>
    %117 = vector.extract_strided_slice %116 {offsets = [0, 0], sizes = [2, 8], strides = [1, 1]} : vector<2x9xf32> to vector<2x8xf32>
    %118 = math.tanh %117 : vector<2x8xf32>
    %119 = vector.shape_cast %110 : vector<2x8x1xf32> to vector<2x8xf32>
    %c0_48 = arith.constant 0 : index
    %c1 = arith.constant 1 : index
    %c0_49 = arith.constant 0 : index
    %120 = vector.load %arg3[%c0_48, %c1, %c0_49] : memref<2x2x8xf32, #tpu.memory_space<vmem>>, vector<2x1x8xf32>
    %121 = vector.shape_cast %120 : vector<2x1x8xf32> to vector<2x8xf32>
    %122 = vector.shape_cast %119 : vector<2x8xf32> to vector<2x1x8xf32>
    tpu.vector_store %arg3[%c0_48, %c1, %c0_49], %122 {strides = array<i32>} : memref<2x2x8xf32, #tpu.memory_space<vmem>>, vector<2x1x8xf32>,
    %c0_50 = arith.constant 0 : index
    %c1_51 = arith.constant 1 : index
    %c0_52 = arith.constant 0 : index
    %123 = vector.load %arg4[%c0_50, %c1_51, %c0_52] : memref<2x2x8xf32, #tpu.memory_space<vmem>>, vector<2x1x8xf32>
    %124 = vector.shape_cast %123 : vector<2x1x8xf32> to vector<2x8xf32>
    %125 = vector.shape_cast %118 : vector<2x8xf32> to vector<2x1x8xf32>
    tpu.vector_store %arg4[%c0_50, %c1_51, %c0_52], %125 {strides = array<i32>} : memref<2x2x8xf32, #tpu.memory_space<vmem>>, vector<2x1x8xf32>,
    %126 = vector.extract_strided_slice %116 {offsets = [0, 8], sizes = [2, 1], strides = [1, 1]} : vector<2x9xf32> to vector<2x1xf32>
    %127 = arith.negf %126 : vector<2x1xf32>
    %128 = math.exp %127 : vector<2x1xf32>
    %cst_53 = arith.constant 1.000000e+00 : f32
    %129 = vector.broadcast %cst_53 : f32 to vector<2x1xf32>
    %130 = arith.addf %129, %128 : vector<2x1xf32>
    %131 = arith.divf %129, %130 : vector<2x1xf32>
    %c0_54 = arith.constant 0 : index
    %c1_55 = arith.constant 1 : index
    %c0_56 = arith.constant 0 : index
    %132 = vector.load %arg5[%c0_54, %c1_55, %c0_56] : memref<2x2x1xf32, #tpu.memory_space<vmem>>, vector<2x1x1xf32>
    %133 = vector.shape_cast %132 : vector<2x1x1xf32> to vector<2x1xf32>
    %134 = vector.shape_cast %131 : vector<2x1xf32> to vector<2x1x1xf32>
    tpu.vector_store %arg5[%c0_54, %c1_55, %c0_56], %134 {strides = array<i32>} : memref<2x2x1xf32, #tpu.memory_space<vmem>>, vector<2x1x1xf32>,
    %c0_57 = arith.constant 0 : index
    %c0_58 = arith.constant 0 : index
    %c0_59 = arith.constant 0 : index
    %135 = vector.load %arg3[%c0_57, %c0_58, %c0_59] : memref<2x2x8xf32, #tpu.memory_space<vmem>>, vector<2x2x8xf32>
    %136 = vector.shape_cast %135 : vector<2x2x8xf32> to vector<4x8xf32>
    %c232 = arith.constant 232 : index
    %c0_60 = arith.constant 0 : index
    %137 = vector.load %arg2[%c232, %c0_60] : memref<288x128xf32, #tpu.memory_space<vmem>>, vector<8x32xf32>
    %cst_61 = arith.constant dense<0.000000e+00> : vector<4x32xf32>
    %138 = tpu.matmul %136, %137, %cst_61 {dimension_numbers = #tpu.dot_dimension_numbers<[1], [0], [0], [1], [0, 0, 1, 1], [], []>} : vector<4x8xf32>, vector<8x32xf32>, vector<4x32xf32> -> vector<4x32xf32>
    %c240 = arith.constant 240 : index
    %c0_62 = arith.constant 0 : index
    %139 = vector.load %arg2[%c240, %c0_62] : memref<288x128xf32, #tpu.memory_space<vmem>>, vector<1x32xf32>
    %140 = vector.broadcast %139 : vector<1x32xf32> to vector<4x32xf32>
    %141 = arith.addf %138, %140 : vector<4x32xf32>
    %cst_63 = arith.constant 0.000000e+00 : f32
    %142 = vector.broadcast %cst_63 : f32 to vector<4x32xf32>
    %143 = arith.maximumf %141, %142 : vector<4x32xf32>
    %c248 = arith.constant 248 : index
    %c0_64 = arith.constant 0 : index
    %144 = vector.load %arg2[%c248, %c0_64] : memref<288x128xf32, #tpu.memory_space<vmem>>, vector<32x16xf32>
    %cst_65 = arith.constant dense<0.000000e+00> : vector<4x16xf32>
    %145 = tpu.matmul %143, %144, %cst_65 {dimension_numbers = #tpu.dot_dimension_numbers<[1], [0], [0], [1], [0, 0, 1, 1], [], []>} : vector<4x32xf32>, vector<32x16xf32>, vector<4x16xf32> -> vector<4x16xf32>
    %c280 = arith.constant 280 : index
    %c0_66 = arith.constant 0 : index
    %146 = vector.load %arg2[%c280, %c0_66] : memref<288x128xf32, #tpu.memory_space<vmem>>, vector<1x16xf32>
    %147 = vector.broadcast %146 : vector<1x16xf32> to vector<4x16xf32>
    %148 = arith.addf %145, %147 : vector<4x16xf32>
    %149 = vector.shape_cast %148 : vector<4x16xf32> to vector<2x2x16xf32>
    %c0_67 = arith.constant 0 : index
    %c0_68 = arith.constant 0 : index
    %c0_69 = arith.constant 0 : index
    %150 = vector.load %arg6[%c0_67, %c0_68, %c0_69] : memref<2x2x16xf32, #tpu.memory_space<vmem>>, vector<2x2x16xf32>
    tpu.vector_store %arg6[%c0_67, %c0_68, %c0_69], %149 {strides = array<i32>} : memref<2x2x16xf32, #tpu.memory_space<vmem>>, vector<2x2x16xf32>,
    return
  }
}

</mosaic_0001>

<bundles_post_ra>
// kernel: deepvoice_forward.1
= control target key start
LH: loop header
LB: loop body
LE: loop exit
PB: predicated region body
PF: predicated region fallthrough
CT: control target
= control target key end

     0   :  { %12 = vsyncpa [#allocation3], 0  ;;  %s2187_s0 = inlined_call_operand.vmem [shape: s32[2,1], index: 0, kind: input, shape index: {}]   ;;  %s2188_s1 = inlined_call_operand.vmem [shape: s32[16,1], index: 1, kind: input, shape index: {}]   ;;  %s2189_s2 = inlined_call_operand.hbm [shape: f32[288,128], index: 2, kind: input, shape index: {}]   ;;  %s2190_s3 = inlined_call_operand.hbm [shape: f32[2,2,8], index: 3, kind: output, shape index: {0}]   ;;  %s2191_s4 = inlined_call_operand.hbm [shape: f32[2,2,8], index: 4, kind: output, shape index: {1}]   ;;  %s2192_s5 = inlined_call_operand.vmem [shape: f32[2,2,1], index: 5, kind: output, shape index: {2}]   ;;  %s2193_s6 = inlined_call_operand.hbm [shape: f32[2,2,16], index: 6, kind: output, shape index: {3}]  }
   0x1   :  { %13 = vsyncpa [#allocation4], 0 }
   0x2   :  { %14 = vsyncpa [#allocation7], 0  ;;  %s1890_s21 = smov [#allocation2]   ;;  %s1796_s25 = scalar_lea.hbm %s2189_s2, 4608 }
   0x3   :  { %s24_s22 = sshll.u32 %s1890_s21, 4  ;;  %p1797_p0 = scmp.ne.s32.totalorder %s2189_s2, %s1796_s25  ;;  %s25_s22 = int_to_ptr.vmem [resolvable:$true] %s24_s22 }
   0x4   :  { %p1800_p1 = scmp.lt.u32.totalorder %s1796_s25, %s2189_s2 }
   0x6   :  { %p1802_p2 = pnand %p1800_p1, %p1797_p0 }
   0x8   :  { %1805 = shalt.err (!%p1802_p2)
}
   0x9   :  { %s1806_s30 = scalar_lea.vmem %s25_s22, 4608  ;;  %p1811_p4 = scmp.lt.s32.totalorder %s25_s22, %s25_s22 }
   0xa   :  { %p1807_p3 = scmp.ne.s32.totalorder %s25_s22, %s1806_s30  ;;  %p1812_p5 = scmp.lt.s32.totalorder %s1806_s30, %s1806_s30 }
   0xc   :  { %p1813_p6 = por %p1812_p5, %p1811_p4 }
   0xe   :  { %p1814_p7 = pnand %p1813_p6, %p1807_p3 }
  0x10   :  { %1817 = shalt.err (!%p1814_p7)
}
  0x11   :  { %s1891_s7 = smov 128   ;;  %s1892_s8 = smov 8  }
  0x12   :  { %30 = dma.hbm_to_vmem [thread:$0]  %s2189_s2, 4608, %s25_s22, [#allocation3], %s1891_s7, %s1891_s7, %s1892_s8  }
  0x13   :  { %1884 = dma.done.wait [#allocation3], 4608  }
  0x14   :  { %1885 = vsyncadd [#allocation3], 4294962688  ;;  %v1893_v0 = vmov 0   ;;  %v1894_v1 = vmov 0.0   ;;  %v136_v2 = vld [vmem:[%s2187_s0] sm:$0x3]  ;;  %v34_v12 = vlaneseq }
  0x15   :  { %1766 = vset.pattern.permute.xlu0 %v1893_v0  ;;  %1767 = vset.pattern.permute.xlu1 %v1893_v0  ;;  %v37_v3 = vld [vmem:[%s2188_s1 + $0x8] sm:$0xff]  ;;  %v143_v4 = vld [vmem:[#allocation2] sm:$0xf]  ;;  %vm148_vm0 = vcmask 1043456   ;;  %vm1895_vm1 = vmmov 0   ;;  %v51_v7 = vld [vmem:[#allocation2 + $0x10] sm:$0xff] }
  0x16   :  { %1604 = vmatprep.subr.mxu1 %v1894_v1  ;;  %138 = vperm.xlu0 %1766, %v136_v2   ;;  %v36_v5 = vld [vmem:[%s2188_s1] sm:$0xff]  ;;  %v50_v6 = vld [vmem:[#allocation2 + $0x8] sm:$0xff]  ;;  %v52_v8 = vld [vmem:[#allocation2 + $0x18] sm:$0xff]  ;;  %v1965_v13 = vand.u32 127, %v34_v12  ;;  %vm144_vm2 = vcmask 31744   ;;  %vm54_vm5 = vcmask 261120  }
  0x17   :  { %42 = vperm.xlu1 %1767, %v37_v3   ;;  %1605 = vmatpush3.msk.msra.mxu1 %vm148_vm0, %v143_v4  ;;  %v1697_v9 = vpack.c.bf16 %v51_v7, %v50_v6  ;;  %v53_v10 = vld [vmem:[#allocation2 + $0x20] sm:$0xff]  ;;  %v262_v20 = vld [vmem:[#allocation2 + $0x28] sm:$0xff]  ;;  %v263_v21 = vld [vmem:[#allocation2 + $0x30] sm:$0xff]  ;;  %v1896_v26 = vmov 1966171168   ;;  %v1975_v29 = vshrl.u32 %v34_v12, 7 }
  0x18   :  { %1606 = vmatprep.mubr.msk.f32.mxu1 %vm1895_vm1, %v1894_v1  ;;  %v1701_v11 = vpack.c.bf16 %v53_v10, %v52_v8  ;;  %v264_v22 = vld [vmem:[#allocation2 + $0x38] sm:$0xff]  ;;  %v1705_v23 = vpack.c.bf16 %v263_v21, %v262_v20  ;;  %v265_v24 = vld [vmem:[#allocation2 + $0x40] sm:$0xff]  ;;  %v224_v27 = vunpack.c.l.s4 %v1896_v26  ;;  %v354_v33 = vld [vmem:[#allocation2 + $0x50] sm:$0xff]  ;;  %s1897_s0 = smov 16   ;;  %vm259_vm7 = vcmask 130048   ;;  %s1899_s1 = smov 120  }
  0x19   :  { %1698 = vmatprep.subr.bf16.mxu0 %v1697_v9  ;;  %v1709_v25 = vpack.c.bf16 %v265_v24, %v264_v22  ;;  %v444_v31 = vld [vmem:[#allocation2 + $0x78] sm:$0xff]  ;;  %v445_v32 = vld [vmem:[#allocation2 + $0x80] sm:$0xff]  ;;  %v1981_v38 = vsub.s32 0, %v1975_v29  ;;  %v446_v52 = vld [vmem:[#allocation2 + $0x88] sm:$0xff]  ;;  %v1898_v58 = vmov 0.0|0.0   ;;  %vm873_vm8 = vcmask 57344  }
  0x1a   :  { %39 = vperm.xlu0 %1766, %v36_v5   ;;  %1700 = vmatpush3.bf16.msra.mxu0 %v1697_v9  ;;  %v225_v28 = vunpack.c.0.s8 %v224_v27  ;;  %v1721_v34 = vpack.c.bf16 %v445_v32, %v444_v31  ;;  %v355_v35 = vld [vmem:[#allocation2 + $0x58] sm:$0xff]  ;;  %v447_v53 = vld [vmem:[#allocation2 + $0x90] sm:$0xff]  ;;  %v356_v55 = vld [vmem:[#allocation2 + $0x60] sm:$0xff]  ;;  %vm786_vm9 = vcmask 1041409   ;;  %vm613_vm10 = vcmask 64512   ;;  %s1901_s20 = smov [#allocation6]  }
  0x1b   :  { %1702 = vmatprep.subr.bf16.mxu0 %v1701_v11  ;;  %1706 = vmatprep.subr.bf16.mxu1 %v1705_v23  ;;  %v1713_v36 = vpack.c.bf16 %v355_v35, %v354_v33  ;;  %v1725_v54 = vpack.c.bf16 %v447_v53, %v446_v52  ;;  %v357_v56 = vld [vmem:[#allocation2 + $0x68] sm:$0xff]  ;;  %v529_v0 = vld [vmem:[#allocation2 + $0xb0] sm:$0xff]  ;;  %v607_v6 = vld [vmem:[#allocation2 + $0xa0] sm:$0xff]  ;;  %vm946_vm11 = vcmask 0   ;;  %s1480_s21 = sshll.u32 %s1901_s20, 4  ;;  %s1902_s22 = smov [#allocation5]   ;;  %s1481_s21 = int_to_ptr.vmem [resolvable:$true] %s1480_s21 }
  0x1c   :  { %v1978_v30 = vsub.s32 %v225_v28, %v1975_v29  ;;  %v1717_v57 = vpack.c.bf16 %v357_v56, %v356_v55  ;;  %v1522_v59 = vld [vmem:[#allocation2 + $0x48] ss:$0 sm:$0xff]  ;;  %v1525_v20 = vld [vmem:[#allocation2 + $0x70] ss:$0 sm:$0xff]  ;;  %s1468_s23 = sshll.u32 %s1902_s22, 4  ;;  %s1818_s24 = scalar_lea.vmem %s1481_s21, 64  ;;  %s1469_s23 = int_to_ptr.vmem [resolvable:$true] %s1468_s23 }
  0x1d   :  { %v528_v63 = vld [vmem:[#allocation2 + $0xa8] sm:$0xff]  ;;  %p1819_p8 = scmp.ne.s32.totalorder %s1481_s21, %s1818_s24  ;;  %p1823_p9 = scmp.lt.s32.totalorder %s1481_s21, %s1481_s21 }
  0x1e   :  { %1704 = vmatpush3.bf16.msra.mxu0 %v1701_v11  ;;  %v1730_v4 = vpack.c.bf16 %v529_v0, %v528_v63  ;;  %v1531_v11 = vld [vmem:[#allocation2 + $0xb8] ss:$0 sm:$0xff]  ;;  %v609_v35 = vld [vmem:[#allocation2 + $0xc8] sm:$0xff]  ;;  %p1824_p10 = scmp.lt.s32.totalorder %s1818_s24, %s1818_s24 }
  0x1f   :  { %1714 = vmatprep.subr.bf16.mxu0 %v1713_v36 }
  0x20   :  { %p1825_p11 = por %p1824_p10, %p1823_p9 }
  0x22   :  { %p1826_p12 = pnand %p1825_p11, %p1819_p8 }
  0x95   :  { %v139_v14 = vpop.permute.xlu0 %138 }
  0x96   :  { %v43_v15 = vpop.permute.xlu1 %42  ;;  %vm140_vm3 = vcmp.eq.s32.totalorder %v1965_v13, %v139_v14 }
  0x97   :  { %v1519_v16 = vsel %vm140_vm3, 1.0, %v1894_v1  ;;  %vm45_vm4 = vcmp.eq.s32.totalorder %v1965_v13, %v43_v15 }
  0x98   :  { %1607 = vmatmul.mubr.msk.f32.vlgmr.msra.gmra.mrb[0].mxu1 %vm144_vm2, %v1519_v16  ;;  %v1516_v18 = vsel %vm45_vm4, 1.0, %v1894_v1 }
  0x99   :  { %v40_v17 = vpop.permute.xlu0 %39  ;;  %1708 = vmatpush3.bf16.msra.mxu1 %v1705_v23 }
  0x9a   :  { %vm44_vm6 = vcmp.eq.s32.totalorder %v1965_v13, %v40_v17  ;;  %1710 = vmatprep.subr.bf16.mxu1 %v1709_v25 }
  0x9b   :  { %v1515_v19 = vsel %vm44_vm6, 1.0, %v1894_v1 }
  0x9c   :  { %1601 = vmatprep.mubr.msk.f32.mxu0 %vm54_vm5, %v1515_v19 }
  0x9d   :  { %1602 = vmatmul.mubr.msk.f32.vlgmr.msra.gmra.mrb[0].mxu0 %vm54_vm5, %v1516_v18  ;;  %1712 = vmatpush3.bf16.msra.mxu1 %v1709_v25 }
  0x9e   :  { %1722 = vmatprep.subr.bf16.mxu1 %v1721_v34  ;;  %1716 = vmatpush3.bf16.msra.mxu0 %v1713_v36  ;;  %v610_v36 = vld [vmem:[#allocation2 + $0xd0] sm:$0xff] }
  0x9f   :  { %1718 = vmatprep.subr.bf16.mxu0 %v1717_v57 }
  0xa2   :  { %1720 = vmatpush3.bf16.msra.mxu0 %v1717_v57 }
  0xa3   :  { %1732 = vmatprep.subr.bf16.mxu0 %v1898_v58 }
 0x16b   :  { %v218_v37 = vpop.f32.mrb[0].mxu1 }
 0x16c   :  { %v229_v39 = vrot.slane %v218_v37, %v1978_v30  ;;  %v1608_v40 = vpop.f32.mrb[1].mxu1 }
 0x16e   :  { %v230_v41 = vcombine.high %v229_v39, %v229_v39  ;;  %v237_v42 = vrot.slane %v229_v39, %v1978_v30  ;;  %v611_v39 = vld [vmem:[#allocation2 + $0xd8] sm:$0xff] }
 0x16f   :  { %v2034_v40 = vpack.c.bf16 %v611_v39, %v610_v36 }
 0x170   :  { %v244_v43 = vrot.slane %v230_v41, %v1978_v30  ;;  %v248_v44 = vrot.slane %v237_v42, %v1981_v38  ;;  %v1603_v45 = vpop.f32.mrb[0].mxu0 }
 0x171   :  { %v127_v46 = vpop.f32.mrb[1].mxu0 }
 0x172   :  { %253 = vrot.lane.b32.xlu1 %v248_v44, %s1897_s0  ;;  %v252_v47 = vrot.slane %v244_v43, %v1981_v38 }
 0x174   :  { %255 = vrot.lane.b32.xlu0 %v252_v47, %s1897_s0 }
 0x1e4   :  { %v254_v48 = vpop.permute.xlu1 %253 }
 0x1e5   :  { %v260_v49 = vsel %vm259_vm7, %v127_v46, %v254_v48 }
 0x1e6   :  { %1617 = vmatprep.mubr.msk.f32.mxu1 %vm54_vm5, %v260_v49  ;;  %v256_v50 = vpop.permute.xlu0 %255 }
 0x1e7   :  { %v261_v51 = vsel %vm259_vm7, %v1603_v45, %v256_v50 }
 0x1e8   :  { %1618 = vmatmul.mubr.msk.f32.vlgmr.msra.gmra.mrb[2].mxu1 %vm54_vm5, %v261_v51 }
 0x1e9   :  { %1724 = vmatpush3.bf16.msra.mxu1 %v1721_v34  ;;  %v608_v34 = vld [vmem:[#allocation2 + $0xc0] sm:$0xff] }
 0x1ea   :  { %1726 = vmatprep.subr.bf16.mxu1 %v1725_v54 }
 0x1ed   :  { %1728 = vmatpush3.bf16.msra.mxu1 %v1725_v54 }
 0x1ee   :  { %1729 = vmatprep.subr.bf16.mxu1 %v1898_v58 }
 0x2bb   :  { %v1619_v60 = vpop.f32.mrb[2].mxu1 }
 0x2bc   :  { %v349_v61 = vadd.f32 %v1619_v60, %v1522_v59  ;;  %v343_v62 = vpop.f32.mrb[3].mxu1 }
 0x2bd   :  { %v344_v2 = vadd.f32 %v1522_v59, %v343_v62 }
 0x2be   :  { %v353_v5 = vmax.f32 %v349_v61, 0.0 }
 0x2bf   :  { %v352_v3 = vmax.f32 %v344_v2, 0.0 }
 0x2c1   :  { %1628 = vmatprep.mubr.msk.f32.mxu0 %vm54_vm5, %v352_v3  ;;  %1639 = vmatprep.mubr.msk.f32.mxu1 %vm54_vm5, %v352_v3 }
 0x2c2   :  { %1629 = vmatmul.mubr.msk.f32.vlgmr.msra.gmra.mrb[2].mxu0 %vm54_vm5, %v353_v5  ;;  %1640 = vmatmul.mubr.msk.f32.vlgmr.msra.gmra.mrb[4].mxu1 %vm54_vm5, %v353_v5 }
 0x2c3   :  { %1731 = vmatpush3.bf16.msra.mxu1 %v1730_v4  ;;  %1646 = vmatprep.mubr.msk.f32.mxu1 %vm1895_vm1, %v1894_v1 }
 0x2c4   :  { %1649 = vmatprep.subr.mxu1 %v1894_v1  ;;  %1662 = vmatprep.mubr.msk.f32.mxu0 %vm1895_vm1, %v1894_v1 }
 0x2c6   :  { %1647 = vmatmul.mubr.msk.f32.vlgmr.msra.gmra.mrb[6].mxu1 %vm259_vm7, %v218_v37  ;;  %v2031_v37 = vpack.c.bf16 %v609_v35, %v608_v34 }
 0x2c7   :  { %1650 = vmatpush3.msra.mxu1 %v607_v6  ;;  %1651 = vmatprep.mubr.msk.f32.mxu1 %vm1895_vm1, %v1894_v1 }
 0x2c8   :  { %1665 = vmatprep.subr.mxu1 %v1894_v1  ;;  %1734 = vmatpush3.bf16.msra.mxu0 %v2031_v37 }
 0x2c9   :  { %1735 = vmatprep.subr.bf16.mxu0 %v1898_v58 }
 0x2ca   :  { %1652 = vmatmul.mubr.f32.vlgmr.msra.gmra.mrb[8].mxu1 %v1894_v1 }
 0x2cb   :  { %1666 = vmatpush3.msra.mxu1 %v607_v6  ;;  %1667 = vmatprep.mubr.msk.f32.mxu1 %vm1895_vm1, %v1894_v1 }
 0x2cc   :  { %1738 = vmatprep.subr.bf16.mxu1 %v1898_v58  ;;  %1737 = vmatpush3.bf16.msra.mxu0 %v2034_v40 }
 0x2cd   :  { %1681 = vmatprep.subr.mxu0 %v1894_v1 }
 0x395   :  { %v1630_v7 = vpop.f32.mrb[2].mxu0  ;;  %v2011_v8 = vpop.f32.mrb[4].mxu1 }
 0x396   :  { %v435_v9 = vpop.f32.mrb[3].mxu0  ;;  %v2013_v10 = vpop.f32.mrb[5].mxu1  ;;  %v2024_v26 = vadd.f32 %v1630_v7, %v1525_v20 }
 0x397   :  { %v2020_v23 = vadd.f32 %v1525_v20, %v435_v9 }
 0x399   :  { %v603_v12 = vpop.f32.mrb[6].mxu1 }
 0x39a   :  { %v1648_v14 = vpop.f32.mrb[7].mxu1  ;;  %v2015_v15 = vadd.f32 %v1531_v11, %v603_v12 }
 0x39d   :  { %v683_v16 = vpop.f32.mrb[8].mxu1 }
 0x39e   :  { %v684_v17 = vadd.f32 %v683_v16, %v2015_v15  ;;  %v1653_v18 = vpop.f32.mrb[9].mxu1 }
 0x39f   :  { %v2041_v18 = vsub.s32 %v1965_v13, %v1975_v29 }
 0x3a0   :  { %v694_v19 = vrot.slane %v684_v17, %v1978_v30  ;;  %v1528_v17 = vld [vmem:[#allocation2 + $0x98] ss:$0 sm:$0xff] }
 0x3a1   :  { %v2044_v20 = vadd.f32 %v1528_v17, %v2013_v10 }
 0x3a2   :  { %v695_v21 = vcombine.high %v694_v19, %v694_v19  ;;  %v702_v22 = vrot.slane %v694_v19, %v1978_v30 }
 0x3a4   :  { %v713_v24 = vrot.slane %v702_v22, %v1981_v38  ;;  %v709_v25 = vrot.slane %v695_v21, %v1978_v30 }
 0x3a6   :  { %v720_v27 = vmul.f32 %v713_v24, %v2020_v23  ;;  %v717_v28 = vrot.slane %v709_v25, %v1981_v38  ;;  %v2047_v24 = vadd.f32 %v2011_v8, %v1528_v17 }
 0x3a8   :  { %v722_v31 = vsel %vm54_vm5, %v720_v27, 0.0  ;;  %v721_v32 = vmul.f32 %v717_v28, %v2024_v26 }
 0x3a9   :  { %723 = vadd.xlane.f32.xlu1 %v722_v31 }
 0x3aa   :  { %v725_v33 = vsel %vm54_vm5, %v721_v32, 0.0 }
 0x3ab   :  { %726 = vadd.xlane.f32.xlu0 %v725_v33 }
 0x436   :  { %v724_v41 = vpop.xlane.xlu1 %723 }
 0x437   :  { %v728_v42 = vmul.f32 0.17677669, %v724_v41 }
 0x438   :  { %v727_v43 = vpop.xlane.xlu0 %726 }
 0x439   :  { %v730_v44 = vrot.slane %v728_v42, 4  ;;  %v729_v45 = vmul.f32 0.17677669, %v727_v43 }
 0x43b   :  { %v731_v46 = vmax.f32 %v728_v42, %v730_v44  ;;  %v736_v47 = vrot.slane %v729_v45, 4 }
 0x43d   :  { %v732_v48 = vrot.slane %v731_v46, 2  ;;  %v737_v49 = vmax.f32 %v729_v45, %v736_v47 }
 0x43f   :  { %v733_v50 = vmax.f32 %v731_v46, %v732_v48  ;;  %v738_v51 = vrot.slane %v737_v49, 2  ;;  %v2061_v48 = vld [vmem:[#allocation2 + $0xe0] ss:$0 sm:$0xff] }
 0x441   :  { %v734_v52 = vrot.slane %v733_v50, 1  ;;  %v739_v53 = vmax.f32 %v737_v49, %v738_v51 }
 0x443   :  { %v735_v54 = vmax.f32 %v733_v50, %v734_v52  ;;  %v740_v55 = vrot.slane %v739_v53, 1 }
 0x445   :  { %v742_v56 = vsub.f32 %v728_v42, %v735_v54  ;;  %v741_v57 = vmax.f32 %v739_v53, %v740_v55 }
 0x447   :  { %v744_v59 = vmul.f32 1.442695, %v742_v56  ;;  %v743_v60 = vsub.f32 %v729_v45, %v741_v57 }
 0x449   :  { %1768 = vpow2.f32 %v744_v59  ;;  %v746_v61 = vmul.f32 1.442695, %v743_v60 }
 0x44b   :  { %1770 = vpow2.f32 %v746_v61 }
 0x453   :  { %v1769_v62 = vpop.eup %1768 }
 0x454   :  { %v748_v63 = vrot.slane %v1769_v62, 4 }
 0x455   :  { %v1771_v0 = vpop.eup %1770 }
 0x456   :  { %v749_v2 = vadd.f32 %v1769_v62, %v748_v63  ;;  %v754_v3 = vrot.slane %v1771_v0, 4 }
 0x458   :  { %v750_v4 = vrot.slane %v749_v2, 2  ;;  %v755_v5 = vadd.f32 %v1771_v0, %v754_v3 }
 0x45a   :  { %v756_v6 = vrot.slane %v755_v5, 2  ;;  %v751_v7 = vadd.f32 %v750_v4, %v749_v2 }
 0x45c   :  { %v752_v9 = vrot.slane %v751_v7, 1  ;;  %v757_v11 = vadd.f32 %v756_v6, %v755_v5 }
 0x45e   :  { %v753_v12 = vadd.f32 %v752_v9, %v751_v7  ;;  %v758_v14 = vrot.slane %v757_v11, 1 }
 0x460   :  { %v759_v16 = vadd.f32 %v758_v14, %v757_v11  ;;  %1772 = vrcp.f32 %v753_v12 }
 0x462   :  { %1774 = vrcp.f32 %v759_v16 }
 0x46a   :  { %v1773_v19 = vpop.eup %1772 }
 0x46b   :  { %v762_v21 = vmul.f32 %v1773_v19, %v1769_v62 }
 0x46c   :  { %v1775_v22 = vpop.eup %1774 }
 0x46d   :  { %v763_v25 = vmul.f32 %v1775_v22, %v1771_v0  ;;  %v764_v27 = vmul.f32 %v762_v21, %v2044_v20  ;;  %v866_v28 = vrot.slane %v762_v21, %v2041_v18 }
 0x46f   :  { %v765_v31 = vmul.f32 %v763_v25, %v2047_v24  ;;  %v766_v13 = vsel %vm54_vm5, %v764_v27, 0.0  ;;  %v870_v32 = vrot.slane %v763_v25, %v2041_v18  ;;  %874 = vst.msk [vmem:[#allocation5] sm:$0x1] %vm873_vm8, %v866_v28 }
 0x470   :  { %v767_v10 = vrot.slane %v766_v13, 4 }
 0x471   :  { %v773_v33 = vsel %vm54_vm5, %v765_v31, 0.0  ;;  %875 = vst.msk [vmem:[#allocation5 + $0x2] sm:$0x1] %vm873_vm8, %v870_v32 }
 0x472   :  { %v768_v8 = vadd.f32 %v767_v10, %v766_v13  ;;  %v774_v34 = vrot.slane %v773_v33, 4 }
 0x474   :  { %v769_v35 = vrot.slane %v768_v8, 2  ;;  %v775_v36 = vadd.f32 %v774_v34, %v773_v33 }
 0x476   :  { %v770_v39 = vadd.f32 %v769_v35, %v768_v8  ;;  %v776_v41 = vrot.slane %v775_v36, 2 }
 0x478   :  { %v771_v42 = vrot.slane %v770_v39, 1  ;;  %v777_v43 = vadd.f32 %v776_v41, %v775_v36 }
 0x47a   :  { %v778_v44 = vrot.slane %v777_v43, 1  ;;  %v772_v45 = vadd.f32 %v771_v42, %v770_v39 }
 0x47c   :  { %v779_v46 = vadd.f32 %v778_v44, %v777_v43 }
 0x47e   :  { %v787_v47 = vsel %vm786_vm9, %v779_v46, %v772_v45 }
 0x47f   :  { %1663 = vmatmul.mubr.msk.f32.vlgmr.msra.gmra.mrb[4].mxu0 %vm54_vm5, %v787_v47 }
 0x480   :  { %1683 = vmatprep.mubr.msk.f32.mxu0 %vm1895_vm1, %v1894_v1 }
 0x552   :  { %v856_v49 = vpop.f32.mrb[4].mxu0 }
 0x553   :  { %v857_v50 = vadd.f32 %v2061_v48, %v856_v49  ;;  %v1664_v51 = vpop.f32.mrb[5].mxu0 }
 0x555   :  { %1776 = vtanh.f32 %v857_v50  ;;  %v1535_v57 = vmul.f32 -1.442695, %v857_v50 }
 0x557   :  { %1778 = vpow2.f32 %v1535_v57 }
 0x55f   :  { %v1777_v52 = vpop.eup %1776 }
 0x560   :  { %v883_v53 = vrot.slane %v1777_v52, %v1978_v30  ;;  %1668 = vmatmul.mubr.msk.f32.vlgmr.msra.gmra.mrb[10].mxu1 %vm613_vm10, %v1777_v52 }
 0x561   :  { %1740 = vmatpush3.bf16.msra.mxu1 %v2031_v37  ;;  %1678 = vmatprep.mubr.msk.f32.mxu1 %vm1895_vm1, %v1894_v1  ;;  %v1779_v59 = vpop.eup %1778 }
 0x562   :  { %v884_v54 = vcombine.high %v883_v53, %v883_v53  ;;  %v891_v55 = vrot.slane %v883_v53, %v1978_v30  ;;  %1741 = vmatprep.subr.bf16.mxu1 %v1898_v58  ;;  %v906_v37 = vadd.f32 1.0, %v1779_v59 }
 0x564   :  { %v898_v56 = vrot.slane %v884_v54, %v1978_v30  ;;  %901 = vst.msk [vmem:[#allocation6] sm:$0x1] %vm873_vm8, %v891_v55  ;;  %1780 = vrcp.f32 %v906_v37 }
 0x565   :  { %1743 = vmatpush3.bf16.msra.mxu1 %v2034_v40 }
 0x566   :  { %902 = vst.msk [vmem:[#allocation6 + $0x2] sm:$0x1] %vm873_vm8, %v898_v56 }
 0x56e   :  { %v1781_v9 = vpop.eup %1780 }
 0x56f   :  { %v916_v11 = vrot.slane %v1781_v9, %v1978_v30 }
 0x571   :  { %v917_v12 = vcombine.high %v916_v11, %v916_v11  ;;  %v924_v16 = vrot.slane %v916_v11, %v1978_v30 }
 0x573   :  { %v931_v14 = vrot.slane %v917_v12, %v1978_v30  ;;  %v935_v17 = vrot.slane %v924_v16, %v1981_v38 }
 0x633   :  { %v1017_v60 = vpop.f32.mrb[10].mxu1 }
 0x634   :  { %v1018_v61 = vadd.f32 %v1017_v60, %v2015_v15  ;;  %v1669_v62 = vpop.f32.mrb[11].mxu1 }
 0x636   :  { %v1028_v63 = vrot.slane %v1018_v61, %v1978_v30 }
 0x638   :  { %v1029_v0 = vcombine.high %v1028_v63, %v1028_v63  ;;  %v1036_v2 = vrot.slane %v1028_v63, %v1978_v30 }
 0x63a   :  { %v1047_v3 = vrot.slane %v1036_v2, %v1981_v38  ;;  %v1043_v40 = vrot.slane %v1029_v0, %v1978_v30 }
 0x63c   :  { %v1054_v4 = vmul.f32 %v1047_v3, %v2020_v23  ;;  %v1051_v5 = vrot.slane %v1043_v40, %v1981_v38  ;;  %v939_v23 = vrot.slane %v931_v14, %v1981_v38 }
 0x63e   :  { %v1056_v6 = vsel %vm54_vm5, %v1054_v4, 0.0  ;;  %v1055_v7 = vmul.f32 %v1051_v5, %v2024_v26  ;;  %v1278_v26 = vld [vmem:[#allocation2 + $0xe8] sm:$0xff]  ;;  %v1900_v5 = vmov 1983009808  }
 0x63f   :  { %1057 = vadd.xlane.f32.xlu0 %v1056_v6  ;;  %1682 = vmatpush3.msra.mxu0 %v1278_v26  ;;  %v1288_v6 = vunpack.c.l.s4 %v1900_v5 }
 0x640   :  { %v1059_v15 = vsel %vm54_vm5, %v1055_v7, 0.0  ;;  %1744 = vmatprep.subr.bf16.mxu0 %v1898_v58 }
 0x641   :  { %1060 = vadd.xlane.f32.xlu1 %v1059_v15  ;;  %v1289_v16 = vunpack.c.0.s8 %v1288_v6 }
 0x652   :  { %942 = vrot.lane.b32.xlu1 %v939_v23, %s1899_s1 }
 0x655   :  { %940 = vrot.lane.b32.xlu0 %v935_v17, %s1899_s1 }
 0x6cc   :  { %v1058_v19 = vpop.xlane.xlu0 %1057 }
 0x6cd   :  { %v1062_v21 = vmul.f32 0.17677669, %v1058_v19  ;;  %v1367_v19 = vld [vmem:[#allocation2 + $0xf8] sm:$0xff] }
 0x6ce   :  { %v1061_v22 = vpop.xlane.xlu1 %1060 }
 0x6cf   :  { %v1064_v25 = vrot.slane %v1062_v21, 4  ;;  %v1063_v27 = vmul.f32 0.17677669, %v1061_v22 }
 0x6d0   :  { %v941_v28 = vpop.permute.xlu0 %940 }
 0x6d1   :  { %v1065_v31 = vmax.f32 %v1062_v21, %v1064_v25  ;;  %v1070_v13 = vrot.slane %v1063_v27, 4  ;;  %947 = vst.msk [vmem:[%s2192_s5] sm:$0x1] %vm946_vm11, %v941_v28 }
 0x6d2   :  { %v943_v32 = vpop.permute.xlu1 %942 }
 0x6d3   :  { %v1066_v10 = vrot.slane %v1065_v31, 2  ;;  %v1071_v33 = vmax.f32 %v1063_v27, %v1070_v13  ;;  %948 = vst.msk [vmem:[%s2192_s5 + $0x2] sm:$0x1] %vm946_vm11, %v943_v32 }
 0x6d5   :  { %v1067_v8 = vmax.f32 %v1065_v31, %v1066_v10  ;;  %v1072_v34 = vrot.slane %v1071_v33, 2 }
 0x6d7   :  { %v1068_v35 = vrot.slane %v1067_v8, 1  ;;  %v1073_v36 = vmax.f32 %v1071_v33, %v1072_v34  ;;  %v1370_v34 = vld [vmem:[#allocation2 + $0x110] sm:$0xff] }
 0x6d9   :  { %v1069_v39 = vmax.f32 %v1067_v8, %v1068_v35  ;;  %v1074_v41 = vrot.slane %v1073_v36, 1 }
 0x6db   :  { %v1076_v42 = vsub.f32 %v1062_v21, %v1069_v39  ;;  %v1075_v43 = vmax.f32 %v1073_v36, %v1074_v41  ;;  %v1368_v21 = vld [vmem:[#allocation2 + $0x100] sm:$0xff]  ;;  %v1539_v36 = vld [vmem:[#allocation2 + $0xf0] ss:$0 sm:$0xff] }
 0x6dc   :  { %v1745_v13 = vpack.c.bf16 %v1368_v21, %v1367_v19 }
 0x6dd   :  { %v1078_v44 = vmul.f32 1.442695, %v1076_v42  ;;  %v1077_v45 = vsub.f32 %v1063_v27, %v1075_v43 }
 0x6df   :  { %1782 = vpow2.f32 %v1078_v44  ;;  %v1080_v46 = vmul.f32 1.442695, %v1077_v45 }
 0x6e1   :  { %1784 = vpow2.f32 %v1080_v46 }
 0x6e9   :  { %v1783_v47 = vpop.eup %1782 }
 0x6ea   :  { %v1082_v49 = vrot.slane %v1783_v47, 4 }
 0x6eb   :  { %v1785_v50 = vpop.eup %1784 }
 0x6ec   :  { %v1083_v51 = vadd.f32 %v1783_v47, %v1082_v49  ;;  %v1088_v52 = vrot.slane %v1785_v50, 4 }
 0x6ee   :  { %v1084_v53 = vrot.slane %v1083_v51, 2  ;;  %v1089_v54 = vadd.f32 %v1785_v50, %v1088_v52 }
 0x6f0   :  { %v1085_v55 = vadd.f32 %v1084_v53, %v1083_v51  ;;  %v1090_v56 = vrot.slane %v1089_v54, 2 }
 0x6f2   :  { %v1086_v57 = vrot.slane %v1085_v55, 1  ;;  %v1091_v59 = vadd.f32 %v1090_v56, %v1089_v54 }
 0x6f4   :  { %v1087_v37 = vadd.f32 %v1086_v57, %v1085_v55  ;;  %v1092_v60 = vrot.slane %v1091_v59, 1 }
 0x6f6   :  { %1786 = vrcp.f32 %v1087_v37  ;;  %v1093_v61 = vadd.f32 %v1092_v60, %v1091_v59 }
 0x6f8   :  { %1788 = vrcp.f32 %v1093_v61 }
 0x700   :  { %v1787_v62 = vpop.eup %1786 }
 0x701   :  { %v1096_v63 = vmul.f32 %v1787_v62, %v1783_v47 }
 0x702   :  { %v1789_v0 = vpop.eup %1788 }
 0x703   :  { %v1195_v2 = vrot.slane %v1096_v63, %v2041_v18  ;;  %v1097_v3 = vmul.f32 %v1789_v0, %v1785_v50  ;;  %v1098_v40 = vmul.f32 %v1096_v63, %v2044_v20 }
 0x705   :  { %1202 = vst.msk [vmem:[#allocation5 + $0x1] sm:$0x1] %vm873_vm8, %v1195_v2  ;;  %v1199_v4 = vrot.slane %v1097_v3, %v2041_v18  ;;  %v1099_v7 = vmul.f32 %v1097_v3, %v2047_v24  ;;  %v1100_v15 = vsel %vm54_vm5, %v1098_v40, 0.0  ;;  %v2110_v18 = vsub.s32 %v1289_v16, %v1975_v29  ;;  %v1369_v29 = vld [vmem:[#allocation2 + $0x108] sm:$0xff] }
 0x706   :  { %v1101_v9 = vrot.slane %v1100_v15, 4  ;;  %v1748_v35 = vpack.c.bf16 %v1370_v34, %v1369_v29 }
 0x707   :  { %1203 = vst.msk [vmem:[#allocation5 + $0x3] sm:$0x1] %vm873_vm8, %v1199_v4  ;;  %v1107_v11 = vsel %vm54_vm5, %v1099_v7, 0.0 }
 0x708   :  { %v1102_v12 = vadd.f32 %v1101_v9, %v1100_v15  ;;  %v1108_v14 = vrot.slane %v1107_v11, 4 }
 0x70a   :  { %v1103_v23 = vrot.slane %v1102_v12, 2  ;;  %v1109_v20 = vadd.f32 %v1108_v14, %v1107_v11 }
 0x70c   :  { %v1104_v17 = vadd.f32 %v1103_v23, %v1102_v12  ;;  %v1110_v26 = vrot.slane %v1109_v20, 2  ;;  %v1276_v24 = vld [vmem:[#allocation5] sm:$0x3] }
 0x70e   :  { %v1277_v22 = vld [vmem:[#allocation5 + $0x2] sm:$0x3]  ;;  %v1105_v25 = vrot.slane %v1104_v17, 1  ;;  %v1111_v27 = vadd.f32 %v1110_v26, %v1109_v20 }
 0x70f   :  { %v1286_v28 = vcombine.low %v1276_v24, %v1277_v22 }
 0x710   :  { %v1112_v31 = vrot.slane %v1111_v27, 1  ;;  %v1106_v10 = vadd.f32 %v1105_v25, %v1104_v17 }
 0x711   :  { %v1293_v32 = vrot.slane %v1286_v28, %v2110_v18 }
 0x712   :  { %v1113_v33 = vadd.f32 %v1112_v31, %v1111_v27 }
 0x713   :  { %1684 = vmatmul.mubr.msk.f32.vlgmr.msra.gmra.mrb[6].mxu0 %vm613_vm10, %v1293_v32 }
 0x714   :  { %v1116_v8 = vsel %vm786_vm9, %v1113_v33, %v1106_v10  ;;  %1746 = vmatpush3.bf16.msra.mxu0 %v1745_v13  ;;  %1694 = vmatprep.mubr.msk.f32.mxu0 %vm1895_vm1, %v1894_v1 }
 0x715   :  { %1679 = vmatmul.mubr.msk.f32.vlgmr.msra.gmra.mrb[12].mxu1 %vm54_vm5, %v1116_v8  ;;  %1747 = vmatprep.subr.bf16.mxu0 %v1898_v58 }
 0x718   :  { %1749 = vmatpush3.bf16.msra.mxu0 %v1748_v35 }
 0x7e6   :  { %v1362_v39 = vpop.f32.mrb[6].mxu0 }
 0x7e7   :  { %v1363_v41 = vadd.f32 %v1539_v36, %v1362_v39  ;;  %v1685_v42 = vpop.f32.mrb[7].mxu0 }
 0x7e8   :  { %v1185_v43 = vpop.f32.mrb[12].mxu1 }
 0x7e9   :  { %v1366_v44 = vmax.f32 %v1363_v41, 0.0  ;;  %v1186_v45 = vadd.f32 %v2061_v48, %v1185_v43  ;;  %v1680_v46 = vpop.f32.mrb[13].mxu1 }
 0x7eb   :  { %1790 = vtanh.f32 %v1186_v45  ;;  %v1538_v47 = vmul.f32 -1.442695, %v1186_v45  ;;  %1695 = vmatmul.mubr.msk.f32.vlgmr.msra.gmra.mrb[8].mxu0 %vm54_vm5, %v1366_v44 }
 0x7ed   :  { %1792 = vpow2.f32 %v1538_v47 }
 0x7f5   :  { %v1791_v1 = vpop.eup %1790 }
 0x7f6   :  { %v1211_v58 = vrot.slane %v1791_v1, %v1978_v30 }
 0x7f7   :  { %v1793_v49 = vpop.eup %1792 }
 0x7f8   :  { %v1212_v50 = vcombine.high %v1211_v58, %v1211_v58  ;;  %v1219_v51 = vrot.slane %v1211_v58, %v1978_v30  ;;  %v1234_v52 = vadd.f32 1.0, %v1793_v49 }
 0x7fa   :  { %v1226_v53 = vrot.slane %v1212_v50, %v1978_v30  ;;  %1794 = vrcp.f32 %v1234_v52  ;;  %1229 = vst.msk [vmem:[#allocation6 + $0x1] sm:$0x1] %vm873_vm8, %v1219_v51 }
 0x7fc   :  { %1230 = vst.msk [vmem:[#allocation6 + $0x3] sm:$0x1] %vm873_vm8, %v1226_v53 }
 0x804   :  { %v1795_v48 = vpop.eup %1794 }
 0x805   :  { %v1244_v54 = vrot.slane %v1795_v48, %v1978_v30 }
 0x807   :  { %v1252_v55 = vrot.slane %v1244_v54, %v1978_v30  ;;  %v1245_v56 = vcombine.high %v1244_v54, %v1244_v54 }
 0x809   :  { %v1263_v57 = vrot.slane %v1252_v55, %v1981_v38  ;;  %v1259_v59 = vrot.slane %v1245_v56, %v1978_v30 }
 0x80b   :  { %1268 = vrot.lane.b32.xlu1 %v1263_v57, %s1899_s1  ;;  %v1267_v37 = vrot.slane %v1259_v59, %v1981_v38 }
 0x80d   :  { %1270 = vrot.lane.b32.xlu0 %v1267_v37, %s1899_s1 }
 0x80e   :  { %1829 = shalt.err (!%p1826_p12)
}
 0x80f   :  { %s1830_s27 = scalar_lea.hbm %s2191_s4, 64 }
 0x810   :  { %p1831_p13 = scmp.ne.s32.totalorder %s2191_s4, %s1830_s27  ;;  %p1834_p0 = scmp.lt.u32.totalorder %s1830_s27, %s2191_s4 }
 0x812   :  { %p1836_p1 = pnand %p1834_p0, %p1831_p13 }
 0x814   :  { %1839 = shalt.err (!%p1836_p1)
}
 0x815   :  { %s1903_s8 = smov 32   ;;  %s1904_s9 = smov 2  }
 0x816   :  { %1486 = dma.vmem_to_hbm [thread:$0]  %s1481_s21, 64, %s2191_s4, [#allocation7], %s1903_s8, %s1903_s8, %s1904_s9  }
 0x817   :  { %s1840_s12 = scalar_lea.vmem %s1469_s23, 64  ;;  %p1845_p3 = scmp.lt.s32.totalorder %s1469_s23, %s1469_s23 }
 0x818   :  { %p1841_p2 = scmp.ne.s32.totalorder %s1469_s23, %s1840_s12  ;;  %p1846_p4 = scmp.lt.s32.totalorder %s1840_s12, %s1840_s12 }
 0x81a   :  { %p1847_p5 = por %p1846_p4, %p1845_p3 }
 0x81c   :  { %p1848_p6 = pnand %p1847_p5, %p1841_p2 }
 0x81e   :  { %1851 = shalt.err (!%p1848_p6)
}
 0x81f   :  { %s1852_s2 = scalar_lea.hbm %s2190_s3, 64 }
 0x820   :  { %p1853_p7 = scmp.ne.s32.totalorder %s2190_s3, %s1852_s2  ;;  %p1856_p8 = scmp.lt.u32.totalorder %s1852_s2, %s2190_s3 }
 0x822   :  { %p1858_p9 = pnand %p1856_p8, %p1853_p7 }
 0x824   :  { %1861 = shalt.err (!%p1858_p9)
}
 0x825   :  { %1474 = dma.vmem_to_hbm [thread:$0]  %s1469_s23, 64, %s2190_s3, [#allocation4], %s1903_s8, %s1903_s8, %s1904_s9   ;;  %v1541_v60 = vld [vmem:[#allocation2 + $0x118] ss:$0 sm:$0xff]  ;;  %vm1460_vm12 = vcmask 123904  }
 0x826   :  { %s1905_s22 = smov [#allocation8]  }
 0x827   :  { %s1494_s24 = sshll.u32 %s1905_s22, 4  ;;  %s1495_s24 = int_to_ptr.vmem [resolvable:$true] %s1494_s24 }
 0x828   :  { %s1862_s3 = scalar_lea.vmem %s1495_s24, 64  ;;  %p1867_p11 = scmp.lt.s32.totalorder %s1495_s24, %s1495_s24 }
 0x829   :  { %p1863_p10 = scmp.ne.s32.totalorder %s1495_s24, %s1862_s3  ;;  %p1868_p12 = scmp.lt.s32.totalorder %s1862_s3, %s1862_s3 }
 0x82b   :  { %p1869_p13 = por %p1868_p12, %p1867_p11 }
 0x82d   :  { %p1870_p0 = pnand %p1869_p13, %p1863_p10 }
 0x87d   :  { %v1269_v30 = vpop.permute.xlu1 %1268 }
 0x87e   :  { %1274 = vst.msk [vmem:[%s2192_s5 + $0x1] sm:$0x1] %vm946_vm11, %v1269_v30 }
 0x87f   :  { %v1271_v38 = vpop.permute.xlu0 %1270 }
 0x880   :  { %1275 = vst.msk [vmem:[%s2192_s5 + $0x3] sm:$0x1] %vm946_vm11, %v1271_v38 }
 0x8be   :  { %v1445_v61 = vpop.f32.mrb[8].mxu0 }
 0x8bf   :  { %v1446_v62 = vadd.f32 %v1541_v60, %v1445_v61  ;;  %v1696_v63 = vpop.f32.mrb[9].mxu0 }
 0x8c1   :  { %v1456_v0 = vrot.slane %v1446_v62, %v2110_v18 }
 0x8c3   :  { %v1457_v2 = vcombine.high %v1456_v0, %v1456_v0  ;;  %1461 = vst.msk [vmem:[#allocation8] sm:$0x3] %vm1460_vm12, %v1456_v0 }
 0x8c5   :  { %1462 = vst.msk [vmem:[#allocation8 + $0x2] sm:$0x3] %vm1460_vm12, %v1457_v2 }
 0x8c6   :  { %1873 = shalt.err (!%p1870_p0)
}
 0x8c7   :  { %s1874_s25 = scalar_lea.hbm %s2193_s6, 64 }
 0x8c8   :  { %p1875_p1 = scmp.ne.s32.totalorder %s2193_s6, %s1874_s25  ;;  %p1878_p2 = scmp.lt.u32.totalorder %s1874_s25, %s2193_s6 }
 0x8ca   :  { %p1880_p3 = pnand %p1878_p2, %p1875_p1 }
 0x8cc   :  { %1883 = shalt.err (!%p1880_p3)
}
 0x8cd   :  { %1500 = dma.vmem_to_hbm [thread:$0]  %s1495_s24, 64, %s2193_s6, [#allocation7], %s1903_s8, %s1903_s8, %s1904_s9  }
 0x8ce   :  { %1886 = dma.done.wait [#allocation4], 64  }
 0x8cf   :  { %1887 = vsyncadd [#allocation4], 4294967232 }
 0x8d0   :  { %1888 = dma.done.wait [#allocation7], 128  }
 0x8d1   :  { %1889 = vsyncadd [#allocation7], 4294967168 }
 0x8d2   :  { %1512 = vsyncpa [#allocation3], 1 }
 0x8d3   :  { %1513 = vsyncpa [#allocation4], 1 }
 0x8d4   :  { %1514 = vsyncpa [#allocation7], 1 }

</bundles_post_ra>
